<compile_context>
chip_gen: v7x
topology: tpu7x:2x2x1
jax: 0.10.0
libtpu: 0.0.40
codegen_flags: <defaults>
</compile_context>

<pallas_src>
import jax
import jax.numpy as jnp
from jax import lax
from jax.experimental import pallas as pl
from jax.experimental.pallas import tpu as pltpu


def _round_up(x, m):
    return ((x + m - 1) // m) * m


def _sublane_multiple(dtype):
    # 8 for 4-byte, 16 for 2-byte, 32 for 1-byte dtypes.
    itemsize = jnp.dtype(dtype).itemsize
    return max(8, 32 // max(1, itemsize))


def _vmem_plan():
    """Generation-aware (vmem_limit_bytes, per-x-block byte budget)."""
    vmem_cap = None
    try:
        info = pltpu.get_tpu_info()
        vmem_cap = getattr(info, "vmem_capacity_bytes", None)
    except Exception:
        vmem_cap = None
    if vmem_cap is None:
        vmem_cap = 64 * 1024 * 1024                  # conservative (v7x per-TC)
    if vmem_cap >= 128 * 1024 * 1024:                # v5e / v6e (128 MiB VMEM)
        return 64 * 1024 * 1024, 8 * 1024 * 1024
    # v7x: 64 MiB VMEM per TC but ~3.2 TB/s HBM -> bigger blocks, tighter limit.
    return 48 * 1024 * 1024, 10 * 1024 * 1024


def _choose_tile_n(n, d, x_dtype, block_budget):
    """Rows per grid step.  VMEM footprint per block is lane-padded:
    tile_n * round_up(d,128) * itemsize."""
    itemsize = jnp.dtype(x_dtype).itemsize
    row_bytes = _round_up(d, 128) * itemsize
    fit = max(1, block_budget // row_bytes)
    if n <= fit:
        return n                                     # single full-extent block
    sub = _sublane_multiple(x_dtype)
    quant = 512 if fit >= 512 else sub               # multiple of sublanes & lanes
    return max(quant, (fit // quant) * quant)


# ---------------------------------------------------------------------------
# Lane-dense path (d_out < 128): output rows mapped to lanes.
# ---------------------------------------------------------------------------
def _linear_kernel_lane_dense(x_ref, w_ref, b_ref, o_ref):
    # x_ref: (tile_n, d)            VMEM, streamed
    # w_ref: (d_out_pad, d)         VMEM, resident
    # b_ref: (d_out_pad, 1)         VMEM, resident
    # o_ref: (1, d_out_pad, tile_n) VMEM
    acc = lax.dot_general(
        w_ref[...], x_ref[...],
        dimension_numbers=(((1,), (1,)), ((), ())),   # w @ x.T (QK^T-style trans-b)
        preferred_element_type=jnp.float32)           # (d_out_pad, tile_n)
    o_ref[0] = (acc + b_ref[...].astype(jnp.float32)).astype(o_ref.dtype)


# ---------------------------------------------------------------------------
# Row-major path (d_out >= 128): plain row-tiled matmul.
# ---------------------------------------------------------------------------
def _linear_kernel_rowmajor(x_ref, w_ref, b_ref, o_ref):
    # x_ref: (tile_n, d); w_ref: (d_out, d); b_ref: (1, d_out); o_ref: (tile_n, d_out)
    acc = lax.dot_general(
        x_ref[...], w_ref[...],
        dimension_numbers=(((1,), (1,)), ((), ())),   # x @ w.T, no transpose op
        preferred_element_type=jnp.float32)           # (tile_n, d_out)
    o_ref[...] = (acc + b_ref[...].astype(jnp.float32)).astype(o_ref.dtype)


def vesn_forward(feature, weight, bias, *, tile_n=None):
    """feature: (..., d), weight: (d_out, d), bias: (d_out,) -> (..., d_out).

    Same semantics as torch.nn.Linear applied to the last dim.
    """
    *lead, d = feature.shape
    d_out = weight.shape[0]
    out_dtype = feature.dtype
    x2d = feature.reshape(-1, d)          # contiguous reshape: free
    n = x2d.shape[0]

    vmem_limit, block_budget = _vmem_plan()

    # Lane packing for the module default (d_out == 1, small d dividing 128):
    # pack g = 128//d consecutive rows per 128-wide row via a free reshape and
    # contract against a block-diagonal weight.  Full-lane HBM stream.
    g = 1
    d_eff, d_out_eff = d, d_out
    w_eff, b_eff = weight, bias
    if d_out == 1 and d < 128 and 128 % d == 0:
        g_try = 128 // d
        if n % g_try == 0 and n >= g_try:
            g = g_try
            d_eff = g * d                              # = 128
            d_out_eff = g * d_out                      # = g
            x2d = x2d.reshape(n // g, d_eff)           # free (contiguous)
            n = n // g
            w_eff = jnp.kron(jnp.eye(g, dtype=weight.dtype), weight)  # (g, 128)
            b_eff = jnp.tile(bias, g)                                  # (g,)

    if tile_n is None:
        tile_n = _choose_tile_n(n, d_eff, x2d.dtype, block_budget)
    num_tiles = pl.cdiv(n, tile_n)        # partial last block; no jnp.pad of x

    itemsize = jnp.dtype(out_dtype).itemsize
    cost = pl.CostEstimate(
        flops=2 * n * d_eff * d_out_eff,
        transcendentals=0,
        bytes_accessed=int(n * d_eff * itemsize + n * d_out_eff * itemsize
                           + (d_out_eff * d_eff + d_out_eff) * itemsize),
    )
    compiler_params = pltpu.CompilerParams(
        dimension_semantics=("parallel",),   # independent row tiles -> 2-TC v7x
        vmem_limit_bytes=vmem_limit,
    )

    if d_out_eff < 128:
        # ---- lane-dense output path ----
        sub_w = _sublane_multiple(w_eff.dtype)
        d_out_pad = _round_up(d_out_eff, sub_w)
        w_pad = jnp.pad(w_eff, ((0, d_out_pad - d_out_eff), (0, 0)))   # tiny
        b_pad = jnp.pad(b_eff, (0, d_out_pad - d_out_eff)).reshape(d_out_pad, 1)

        out3d = pl.pallas_call(
            _linear_kernel_lane_dense,
            out_shape=jax.ShapeDtypeStruct((num_tiles, d_out_pad, tile_n), out_dtype),
            grid_spec=pltpu.PrefetchScalarGridSpec(
                num_scalar_prefetch=0,
                grid=(num_tiles,),
                in_specs=[
                    pl.BlockSpec((tile_n, d_eff), lambda i: (i, 0)),       # streamed
                    pl.BlockSpec((d_out_pad, d_eff), lambda i: (0, 0)),    # resident
                    pl.BlockSpec((d_out_pad, 1), lambda i: (0, 0)),        # resident
                ],
                out_specs=pl.BlockSpec((1, d_out_pad, tile_n), lambda i: (i, 0, 0)),
            ),
            compiler_params=compiler_params,
            cost_estimate=cost,
        )(x2d, w_pad, b_pad)

        # Tiny-output layout plumbing: (tiles, d_out_pad, tile_n) -> rows.
        out = out3d[:, :d_out_eff, :].transpose(0, 2, 1)
        out = out.reshape(num_tiles * tile_n, d_out_eff)[:n]   # drop tail rows
        if g > 1:
            out = out.reshape(n * g, d_out)                    # unpack groups
        return out.reshape(*lead, d_out)

    # ---- row-major output path (d_out already lane-dense) ----
    out2d = pl.pallas_call(
        _linear_kernel_rowmajor,
        out_shape=jax.ShapeDtypeStruct((n, d_out_eff), out_dtype),
        grid_spec=pltpu.PrefetchScalarGridSpec(
            num_scalar_prefetch=0,
            grid=(num_tiles,),
            in_specs=[
                pl.BlockSpec((tile_n, d_eff), lambda i: (i, 0)),       # streamed
                pl.BlockSpec((d_out_eff, d_eff), lambda i: (0, 0)),    # resident
                pl.BlockSpec((1, d_out_eff), lambda i: (0, 0)),        # resident
            ],
            out_specs=pl.BlockSpec((tile_n, d_out_eff), lambda i: (i, 0)),
        ),
        compiler_params=compiler_params,
        cost_estimate=cost,
    )(x2d, w_eff, b_eff.reshape(1, d_out_eff))
    return out2d.reshape(*lead, d_out)


def init_vesn_params(key, d, d_out=1, dtype=jnp.float32):
    # Deterministic init mimicking nn.Linear default: U(-1/sqrt(d), 1/sqrt(d)).
    kw, kb = jax.random.split(key)
    bound = 1.0 / (d ** 0.5)
    weight = jax.random.uniform(kw, (d_out, d), dtype, -bound, bound)
    bias = jax.random.uniform(kb, (d_out,), dtype, -bound, bound)
    return weight, bias


if __name__ == "__main__":
    key = jax.random.PRNGKey(0)
    k_feat, k_p1, k_p2 = jax.random.split(key, 3)

    batch, seq, d = 2, 8, 32
    feature = jax.random.normal(k_feat, (batch, seq, d), dtype=jnp.float32)

    # Default module config: d_out = 1 (lane-packed + lane-dense path, g = 4).
    w1, b1 = init_vesn_params(k_p1, d, d_out=1)
    out1 = jax.block_until_ready(vesn_forward(feature, w1, b1))
    ref1 = feature @ w1.T + b1
    assert out1.shape == (batch, seq, 1)
    assert jnp.allclose(out1, ref1, atol=1e-5, rtol=1e-5)

    # Small d_out > 1: lane-dense output path (unpacked).
    w8, b8 = init_vesn_params(k_p2, d, d_out=8)
    out8 = jax.block_until_ready(vesn_forward(feature, w8, b8))
    ref8 = feature @ w8.T + b8
    assert out8.shape == (batch, seq, 8)
    assert jnp.allclose(out8, ref8, atol=1e-5, rtol=1e-5)

    print("KERNEL_OK")
</pallas_src>

<mosaic_0001>
module attributes {stable_mosaic.version = 11 : i64} {
  func.func @_linear_kernel_lane_dense(%arg0: i32, %arg1: memref<4x128xf32, #tpu.memory_space<vmem>>, %arg2: memref<8x128xf32, #tpu.memory_space<vmem>>, %arg3: memref<8x1xf32, #tpu.memory_space<vmem>>, %arg4: memref<1x8x4xf32, #tpu.memory_space<vmem>>) attributes {dimension_semantics = [#tpu.dimension_semantics<parallel>], iteration_bounds = array<i64: 1>, scalar_prefetch = 0 : i64, scratch_operands = 0 : i64, tpu.core_type = #tpu.core_type<tc>, window_params = [{transform_indices = @transform_0, window_bounds = array<i64: 4, 128>}, {pipeline_mode = #tpu.pipeline_mode<synchronous>, transform_indices = @transform_1, window_bounds = array<i64: 8, 128>}, {pipeline_mode = #tpu.pipeline_mode<synchronous>, transform_indices = @transform_2, window_bounds = array<i64: 8, 1>}, {transform_indices = @transform_3, window_bounds = array<i64: 1, 8, 4>}]} {
    %c0 = arith.constant 0 : index
    %c0_0 = arith.constant 0 : index
    %0 = vector.load %arg2[%c0, %c0_0] : memref<8x128xf32, #tpu.memory_space<vmem>>, vector<8x128xf32>
    %c0_1 = arith.constant 0 : index
    %c0_2 = arith.constant 0 : index
    %1 = vector.load %arg1[%c0_1, %c0_2] : memref<4x128xf32, #tpu.memory_space<vmem>>, vector<4x128xf32>
    %cst = arith.constant dense<0.000000e+00> : vector<8x4xf32>
    %2 = tpu.matmul %0, %1, %cst {dimension_numbers = #tpu.dot_dimension_numbers<[1], [1], [0], [0], [0, 0, 1, 0], [], []>} : vector<8x128xf32>, vector<4x128xf32>, vector<8x4xf32> -> vector<8x4xf32>
    %c0_3 = arith.constant 0 : index
    %c0_4 = arith.constant 0 : index
    %3 = vector.load %arg3[%c0_3, %c0_4] : memref<8x1xf32, #tpu.memory_space<vmem>>, vector<8x1xf32>
    %4 = vector.broadcast %3 : vector<8x1xf32> to vector<8x4xf32>
    %5 = arith.addf %2, %4 : vector<8x4xf32>
    %c0_5 = arith.constant 0 : index
    %c0_6 = arith.constant 0 : index
    %c0_7 = arith.constant 0 : index
    %6 = vector.load %arg4[%c0_5, %c0_6, %c0_7] : memref<1x8x4xf32, #tpu.memory_space<vmem>>, vector<1x8x4xf32>
    %7 = vector.shape_cast %6 : vector<1x8x4xf32> to vector<8x4xf32>
    %8 = vector.shape_cast %5 : vector<8x4xf32> to vector<1x8x4xf32>
    tpu.vector_store %arg4[%c0_5, %c0_6, %c0_7], %8 {strides = array<i32>} : memref<1x8x4xf32, #tpu.memory_space<vmem>>, vector<1x8x4xf32>,
    return
  }
  func.func @transform_0(%arg0: i32) -> (i32, i32) {
    %c0_i32 = arith.constant 0 : i32
    %c0_i32_0 = arith.constant 0 : i32
    return %arg0, %c0_i32 : i32, i32
  }
  func.func @transform_1(%arg0: i32) -> (i32, i32) {
    %c0_i32 = arith.constant 0 : i32
    %c0_i32_0 = arith.constant 0 : i32
    %c0_i32_1 = arith.constant 0 : i32
    return %c0_i32, %c0_i32_0 : i32, i32
  }
  func.func @transform_2(%arg0: i32) -> (i32, i32) {
    %c0_i32 = arith.constant 0 : i32
    %c0_i32_0 = arith.constant 0 : i32
    %c0_i32_1 = arith.constant 0 : i32
    return %c0_i32, %c0_i32_0 : i32, i32
  }
  func.func @transform_3(%arg0: i32) -> (i32, i32, i32) {
    %c0_i32 = arith.constant 0 : i32
    %c0_i32_0 = arith.constant 0 : i32
    %c0_i32_1 = arith.constant 0 : i32
    return %arg0, %c0_i32, %c0_i32_0 : i32, i32, i32
  }
}

</mosaic_0001>

<bundles_post_ra>
// kernel: tpu_custom_call.1
= control target key start
LH: loop header
LB: loop body
LE: loop exit
PB: predicated region body
PF: predicated region fallthrough
CT: control target
= control target key end

     0   :  { %v109_v0 = vmov 0.0   ;;  %vm110_vm0 = vmmov 0   ;;  %v111_v4 = vmov 0   ;;  %vm92_vm1 = vcmask 31744   ;;  %s144_s0 = inlined_call_operand.vmem [shape: f32[4,128], index: 0, kind: input, shape index: {}]   ;;  %s145_s1 = inlined_call_operand.vmem [shape: f32[8,128], index: 1, kind: input, shape index: {}]   ;;  %s146_s2 = inlined_call_operand.vmem [shape: f32[8,1], index: 2, kind: input, shape index: {}]   ;;  %s147_s3 = inlined_call_operand.vmem [shape: f32[1,8,4], index: 3, kind: output, shape index: {}]  }
   0x1   :  { %100 = vmatprep.subr.mxu0 %v109_v0  ;;  %v15_v1 = vld [vmem:[%s144_s0] sm:$0xf]  ;;  %102 = vmatprep.mubr.msk.f32.mxu0 %vm110_vm0, %v109_v0 }
   0x2   :  { %v16_v2 = vld [vmem:[%s146_s2] sm:$0xff]  ;;  %101 = vmatpush3.xpose.msra.mxu0 %v15_v1  ;;  %108 = vset.pattern.permute.xlu0 %v111_v4 }
   0x3   :  { %v14_v3 = vld [vmem:[%s145_s1] sm:$0xff]  ;;  %19 = vperm.xlu0 %108, %v16_v2  }
   0x5   :  { %103 = vmatmul.mubr.f32.vlgmr.msra.gmra.mrb[0].mxu0 %v14_v3 }
  0x82   :  { %v20_v5 = vpop.permute.xlu0 %19 }
  0xd8   :  { %v88_v6 = vpop.f32.mrb[0].mxu0 }
  0xd9   :  { %v89_v7 = vadd.f32 %v88_v6, %v20_v5  ;;  %v104_v8 = vpop.f32.mrb[1].mxu0 }
  0xdb   :  { %93 = vst.msk [vmem:[%s147_s3] sm:$0xff] %vm92_vm1, %v89_v7 }

</bundles_post_ra>
